<compile_context>
chip_gen: v5e
topology: v5e:2x2
jax: 0.10.0
libtpu: 0.0.40
codegen_flags: <defaults>
</compile_context>

<pallas_src>
import functools

import jax
import jax.numpy as jnp
from jax.experimental import pallas as pl
from jax.experimental.pallas import tpu as pltpu

LANE = 128
SUBLANE = 8


def _cdiv(a, b):
    return -(-a // b)


def _round_up(x, m):
    return ((x + m - 1) // m) * m


# ----------------------------------------------------------------------------
# Fused MLP kernel: statically-unrolled  x @ W_i + b_i -> ReLU ... -> [sigmoid]
# Weights arrive BN-folded, lane-padded, bf16; biases f32; activations stay in
# vregs/VMEM (f32 accumulators).
# ----------------------------------------------------------------------------
def _fused_mlp_kernel(*refs, n_layers: int, sigmoid: bool, pack_output: bool):
    x_ref = refs[0]
    o_ref = refs[-1]
    wb = refs[1:-1]                                     # (w0, b0, w1, b1, ...)
    y = x_ref[...]                                      # (tile_m, K) f32
    for i in range(n_layers):                           # static Python unroll
        w = wb[2 * i][...]                              # bf16 (in_i, out_pad_i)
        b = wb[2 * i + 1][...]                          # f32  (1, out_pad_i)
        # bf16 operands, f32 accumulation; bias add stays f32.
        y = jnp.dot(y.astype(jnp.bfloat16), w,
                    preferred_element_type=jnp.float32) + b
        if i < n_layers - 1:
            y = jnp.maximum(y, 0.0)                     # ReLU (dropout = identity in eval)
    if pack_output:
        # Final layer has a single real column: transpose on the XLU and keep only
        # the score row -> lane-dense (1, tile_m) store instead of (tile_m, 128).
        y = y.T[0:1, :]
    if sigmoid:
        y = jax.nn.sigmoid(y)
    o_ref[...] = y.astype(o_ref.dtype)


def _choose_tile(batch, max_tile_m):
    """Balanced, 8-aligned batch tile; force >=2 tiles so v7x uses both TCs."""
    b_aligned = _round_up(max(batch, SUBLANE), SUBLANE)
    n_tiles = _cdiv(b_aligned, max_tile_m)
    if n_tiles < 2 and b_aligned >= 2 * SUBLANE:
        n_tiles = 2
    tile_m = _round_up(_cdiv(b_aligned, n_tiles), SUBLANE)
    grid0 = _cdiv(batch, tile_m)
    return tile_m, grid0


def fused_mlp(x, ws, bs, out_dims, *, sigmoid, max_tile_m=1024):
    """x: (B, K) f32. ws/bs: pre-folded, pre-padded weights (bf16) / biases (f32)."""
    B, K = x.shape
    n_layers = len(ws)
    n_out = out_dims[-1]
    n_pad_last = ws[-1].shape[1]

    tile_m, grid0 = _choose_tile(B, max_tile_m)
    b_pad = grid0 * tile_m
    pack_output = (n_out == 1) and (tile_m % LANE == 0)

    # x is streamed directly (no padded HBM copy): last block dim == full K is legal,
    # and a ragged last batch tile only produces garbage in rows that get sliced off.
    inputs = [x]
    in_specs = [pl.BlockSpec((tile_m, K), lambda i: (i, 0))]
    for w, b in zip(ws, bs):
        inputs += [w, b]
        in_specs += [
            pl.BlockSpec(w.shape, lambda i: (0, 0)),    # full weight, grid-invariant
            pl.BlockSpec(b.shape, lambda i: (0, 0)),    # folded bias (f32)
        ]

    if pack_output:
        out_shape = jax.ShapeDtypeStruct((1, b_pad), jnp.float32)
        out_spec = pl.BlockSpec((1, tile_m), lambda i: (0, i))      # lane-dense scores
    else:
        out_shape = jax.ShapeDtypeStruct((b_pad, n_pad_last), jnp.float32)
        out_spec = pl.BlockSpec((tile_m, n_pad_last), lambda i: (i, 0))

    dim_sem = ("parallel",) if grid0 >= 2 else ("arbitrary",)
    kernel = functools.partial(_fused_mlp_kernel, n_layers=n_layers,
                               sigmoid=sigmoid, pack_output=pack_output)
    out = pl.pallas_call(
        kernel,
        out_shape=out_shape,
        grid_spec=pltpu.PrefetchScalarGridSpec(
            num_scalar_prefetch=0,
            grid=(grid0,),
            in_specs=in_specs,
            out_specs=out_spec,
        ),
        compiler_params=pltpu.CompilerParams(dimension_semantics=dim_sem),
    )(*inputs)

    if pack_output:
        return out[0, :B].reshape(B, 1)
    return out[:B, :n_out]


# ----------------------------------------------------------------------------
# Parameter construction (deterministic, mirrors the PyTorch __init__)
# ----------------------------------------------------------------------------
def xavier_normal(key, fan_out, fan_in, gain=1.0):
    std = gain * (2.0 / (fan_in + fan_out)) ** 0.5
    return std * jax.random.normal(key, (fan_out, fan_in), dtype=jnp.float32)


def init_params(key, input_size, hidden_size, bias):
    """Per-layer dicts: weight (out,in), bias (out,), use_bias, and BN on its output."""
    params = []
    dims = [input_size] + list(hidden_size)
    keys = jax.random.split(key, len(hidden_size))
    for i in range(len(hidden_size)):
        fan_in, fan_out = dims[i], dims[i + 1]
        w = xavier_normal(keys[i], fan_out, fan_in)           # nn.init.xavier_normal_
        b = jnp.zeros((fan_out,), jnp.float32)                # nn.init.zeros_
        # PyTorch spec: layer 0 uses bias[0]; layer j>=1 comes from loop index j-1 -> bias[j-1].
        use_bias = bool(bias[0] if i == 0 else bias[i - 1])
        layer = {"w": w, "b": b, "use_bias": use_bias}
        # BatchNorm1d(hidden_size[i]) normalizes the OUTPUT of linear i (i < last);
        # eval-mode defaults: gamma=1, beta=0, running_mean=0, running_var=1.
        if i < len(hidden_size) - 1:
            h = fan_out
            layer["bn"] = {
                "gamma": jnp.ones((h,), jnp.float32),
                "beta": jnp.zeros((h,), jnp.float32),
                "mean": jnp.zeros((h,), jnp.float32),
                "var": jnp.ones((h,), jnp.float32),
                "eps": 1e-5,
            }
        params.append(layer)
    return params


def prepare_params(params):
    """One-time prep: fold eval-mode BN into W/b (f32), lane-pad output dims (and
    input dims of layers > 0) to 128, cast weights to bf16. Biases stay f32."""
    ws, bs, out_dims = [], [], []
    for li, layer in enumerate(params):
        w_t = layer["w"].T.astype(jnp.float32)                # (in, out) for x @ W
        b = layer["b"] if layer["use_bias"] else jnp.zeros_like(layer["b"])
        if "bn" in layer:
            bn = layer["bn"]
            scale = bn["gamma"] / jnp.sqrt(bn["var"] + bn["eps"])
            shift = bn["beta"] - bn["mean"] * scale
            w_t = w_t * scale[None, :]                        # fold in f32
            b = b * scale + shift
        in_dim, out_dim = w_t.shape
        out_pad = _round_up(out_dim, LANE)
        # Layer 0 keeps true input rows (so x needs no padding); later layers need
        # rows matching the previous layer's lane-padded width (zero rows are exact).
        in_rows = in_dim if li == 0 else _round_up(in_dim, LANE)
        w_p = jnp.zeros((in_rows, out_pad), jnp.float32).at[:in_dim, :out_dim].set(w_t)
        b_p = jnp.zeros((1, out_pad), jnp.float32).at[0, :out_dim].set(b)
        ws.append(w_p.astype(jnp.bfloat16))
        bs.append(b_p)
        out_dims.append(out_dim)
    return ws, bs, out_dims


# ----------------------------------------------------------------------------
# Pure-JAX f32 reference for correctness
# ----------------------------------------------------------------------------
def reference_forward(x, params, *, sigmoid):
    n_layers = len(params)
    y = x
    for i, layer in enumerate(params):
        b = layer["b"] if layer["use_bias"] else jnp.zeros_like(layer["b"])
        y = y @ layer["w"].T + b
        if i != n_layers - 1:
            bn = layer["bn"]
            y = (y - bn["mean"]) / jnp.sqrt(bn["var"] + bn["eps"]) * bn["gamma"] + bn["beta"]
            y = jnp.maximum(y, 0.0)
            # Dropout: identity in eval mode.
    if sigmoid:
        y = jax.nn.sigmoid(y)
    return y


if __name__ == "__main__":
    # Module config (DIN-style MLP head).
    input_size = 32
    hidden_size = [64, 32, 1]
    bias = [True, True, True]
    use_sigmoid = True

    key = jax.random.PRNGKey(0)
    kp, kx = jax.random.split(key)
    params = init_params(kp, input_size, hidden_size, bias)
    ws, bs, out_dims = prepare_params(params)            # one-time, reused across calls

    # small (tile_m=8, grid=2) / ragged (partial edge block) / large (lane-packed N=1 output)
    for batch in (16, 13, 512):
        xb = jax.random.normal(jax.random.fold_in(kx, batch),
                               (batch, input_size), dtype=jnp.float32)
        out = jax.block_until_ready(fused_mlp(xb, ws, bs, out_dims, sigmoid=use_sigmoid))
        ref = reference_forward(xb, params, sigmoid=use_sigmoid)
        assert out.shape == (batch, hidden_size[-1])
        # bf16 matmul operands vs f32 reference -> tolerance loosened accordingly.
        assert jnp.allclose(out, ref, rtol=2e-2, atol=2e-2), f"mismatch at batch={batch}"

    print("KERNEL_OK")
</pallas_src>

<mosaic_0001>
module attributes {stable_mosaic.version = 11 : i64} {
  func.func @_fused_mlp_kernel(%arg0: i32, %arg1: memref<8x32xf32, #tpu.memory_space<vmem>>, %arg2: memref<32x128xbf16, #tpu.memory_space<vmem>>, %arg3: memref<1x128xf32, #tpu.memory_space<vmem>>, %arg4: memref<128x128xbf16, #tpu.memory_space<vmem>>, %arg5: memref<1x128xf32, #tpu.memory_space<vmem>>, %arg6: memref<128x128xbf16, #tpu.memory_space<vmem>>, %arg7: memref<1x128xf32, #tpu.memory_space<vmem>>, %arg8: memref<8x128xf32, #tpu.memory_space<vmem>>) attributes {dimension_semantics = [#tpu.dimension_semantics<parallel>], iteration_bounds = array<i64: 2>, scalar_prefetch = 0 : i64, scratch_operands = 0 : i64, tpu.core_type = #tpu.core_type<tc>, window_params = [{transform_indices = @transform_0, window_bounds = array<i64: 8, 32>}, {pipeline_mode = #tpu.pipeline_mode<synchronous>, transform_indices = @transform_1, window_bounds = array<i64: 32, 128>}, {pipeline_mode = #tpu.pipeline_mode<synchronous>, transform_indices = @transform_2, window_bounds = array<i64: 1, 128>}, {pipeline_mode = #tpu.pipeline_mode<synchronous>, transform_indices = @transform_3, window_bounds = array<i64: 128, 128>}, {pipeline_mode = #tpu.pipeline_mode<synchronous>, transform_indices = @transform_4, window_bounds = array<i64: 1, 128>}, {pipeline_mode = #tpu.pipeline_mode<synchronous>, transform_indices = @transform_5, window_bounds = array<i64: 128, 128>}, {pipeline_mode = #tpu.pipeline_mode<synchronous>, transform_indices = @transform_6, window_bounds = array<i64: 1, 128>}, {transform_indices = @transform_7, window_bounds = array<i64: 8, 128>}]} {
    %c0 = arith.constant 0 : index
    %c0_0 = arith.constant 0 : index
    %0 = vector.load %arg1[%c0, %c0_0] : memref<8x32xf32, #tpu.memory_space<vmem>>, vector<8x32xf32>
    %c0_1 = arith.constant 0 : index
    %c0_2 = arith.constant 0 : index
    %1 = vector.load %arg2[%c0_1, %c0_2] : memref<32x128xbf16, #tpu.memory_space<vmem>>, vector<32x128xbf16>
    %c0_3 = arith.constant 0 : index
    %c0_4 = arith.constant 0 : index
    %2 = vector.load %arg3[%c0_3, %c0_4] : memref<1x128xf32, #tpu.memory_space<vmem>>, vector<1x128xf32>
    %3 = arith.truncf %0 : vector<8x32xf32> to vector<8x32xbf16>
    %cst = arith.constant dense<0.000000e+00> : vector<8x128xf32>
    %4 = tpu.matmul %3, %1, %cst {dimension_numbers = #tpu.dot_dimension_numbers<[1], [0], [0], [1], [0, 0, 1, 1], [], []>} : vector<8x32xbf16>, vector<32x128xbf16>, vector<8x128xf32> -> vector<8x128xf32>
    %5 = vector.broadcast %2 : vector<1x128xf32> to vector<8x128xf32>
    %6 = arith.addf %4, %5 : vector<8x128xf32>
    %cst_5 = arith.constant 0.000000e+00 : f32
    %7 = vector.broadcast %cst_5 : f32 to vector<8x128xf32>
    %8 = arith.maximumf %6, %7 : vector<8x128xf32>
    %c0_6 = arith.constant 0 : index
    %c0_7 = arith.constant 0 : index
    %9 = vector.load %arg4[%c0_6, %c0_7] : memref<128x128xbf16, #tpu.memory_space<vmem>>, vector<128x128xbf16>
    %c0_8 = arith.constant 0 : index
    %c0_9 = arith.constant 0 : index
    %10 = vector.load %arg5[%c0_8, %c0_9] : memref<1x128xf32, #tpu.memory_space<vmem>>, vector<1x128xf32>
    %11 = arith.truncf %8 : vector<8x128xf32> to vector<8x128xbf16>
    %cst_10 = arith.constant dense<0.000000e+00> : vector<8x128xf32>
    %12 = tpu.matmul %11, %9, %cst_10 {dimension_numbers = #tpu.dot_dimension_numbers<[1], [0], [0], [1], [0, 0, 1, 1], [], []>} : vector<8x128xbf16>, vector<128x128xbf16>, vector<8x128xf32> -> vector<8x128xf32>
    %13 = vector.broadcast %10 : vector<1x128xf32> to vector<8x128xf32>
    %14 = arith.addf %12, %13 : vector<8x128xf32>
    %cst_11 = arith.constant 0.000000e+00 : f32
    %15 = vector.broadcast %cst_11 : f32 to vector<8x128xf32>
    %16 = arith.maximumf %14, %15 : vector<8x128xf32>
    %c0_12 = arith.constant 0 : index
    %c0_13 = arith.constant 0 : index
    %17 = vector.load %arg6[%c0_12, %c0_13] : memref<128x128xbf16, #tpu.memory_space<vmem>>, vector<128x128xbf16>
    %c0_14 = arith.constant 0 : index
    %c0_15 = arith.constant 0 : index
    %18 = vector.load %arg7[%c0_14, %c0_15] : memref<1x128xf32, #tpu.memory_space<vmem>>, vector<1x128xf32>
    %19 = arith.truncf %16 : vector<8x128xf32> to vector<8x128xbf16>
    %cst_16 = arith.constant dense<0.000000e+00> : vector<8x128xf32>
    %20 = tpu.matmul %19, %17, %cst_16 {dimension_numbers = #tpu.dot_dimension_numbers<[1], [0], [0], [1], [0, 0, 1, 1], [], []>} : vector<8x128xbf16>, vector<128x128xbf16>, vector<8x128xf32> -> vector<8x128xf32>
    %21 = vector.broadcast %18 : vector<1x128xf32> to vector<8x128xf32>
    %22 = arith.addf %20, %21 : vector<8x128xf32>
    %23 = arith.negf %22 : vector<8x128xf32>
    %24 = math.exp %23 : vector<8x128xf32>
    %cst_17 = arith.constant 1.000000e+00 : f32
    %25 = vector.broadcast %cst_17 : f32 to vector<8x128xf32>
    %26 = arith.addf %25, %24 : vector<8x128xf32>
    %27 = arith.divf %25, %26 : vector<8x128xf32>
    %c0_18 = arith.constant 0 : index
    %c0_19 = arith.constant 0 : index
    %28 = vector.load %arg8[%c0_18, %c0_19] : memref<8x128xf32, #tpu.memory_space<vmem>>, vector<8x128xf32>
    tpu.vector_store %arg8[%c0_18, %c0_19], %27 {strides = array<i32>} : memref<8x128xf32, #tpu.memory_space<vmem>>, vector<8x128xf32>,
    return
  }
  func.func @transform_0(%arg0: i32) -> (i32, i32) {
    %c0_i32 = arith.constant 0 : i32
    %c0_i32_0 = arith.constant 0 : i32
    return %arg0, %c0_i32 : i32, i32
  }
  func.func @transform_1(%arg0: i32) -> (i32, i32) {
    %c0_i32 = arith.constant 0 : i32
    %c0_i32_0 = arith.constant 0 : i32
    %c0_i32_1 = arith.constant 0 : i32
    return %c0_i32, %c0_i32_0 : i32, i32
  }
  func.func @transform_2(%arg0: i32) -> (i32, i32) {
    %c0_i32 = arith.constant 0 : i32
    %c0_i32_0 = arith.constant 0 : i32
    %c0_i32_1 = arith.constant 0 : i32
    return %c0_i32, %c0_i32_0 : i32, i32
  }
  func.func @transform_3(%arg0: i32) -> (i32, i32) {
    %c0_i32 = arith.constant 0 : i32
    %c0_i32_0 = arith.constant 0 : i32
    %c0_i32_1 = arith.constant 0 : i32
    return %c0_i32, %c0_i32_0 : i32, i32
  }
  func.func @transform_4(%arg0: i32) -> (i32, i32) {
    %c0_i32 = arith.constant 0 : i32
    %c0_i32_0 = arith.constant 0 : i32
    %c0_i32_1 = arith.constant 0 : i32
    return %c0_i32, %c0_i32_0 : i32, i32
  }
  func.func @transform_5(%arg0: i32) -> (i32, i32) {
    %c0_i32 = arith.constant 0 : i32
    %c0_i32_0 = arith.constant 0 : i32
    %c0_i32_1 = arith.constant 0 : i32
    return %c0_i32, %c0_i32_0 : i32, i32
  }
  func.func @transform_6(%arg0: i32) -> (i32, i32) {
    %c0_i32 = arith.constant 0 : i32
    %c0_i32_0 = arith.constant 0 : i32
    %c0_i32_1 = arith.constant 0 : i32
    return %c0_i32, %c0_i32_0 : i32, i32
  }
  func.func @transform_7(%arg0: i32) -> (i32, i32) {
    %c0_i32 = arith.constant 0 : i32
    %c0_i32_0 = arith.constant 0 : i32
    return %arg0, %c0_i32 : i32, i32
  }
}

</mosaic_0001>

<bundles_post_ra>
// kernel: tpu_custom_call.1
= control target key start
LH: loop header
LB: loop body
LE: loop exit
PB: predicated region body
PF: predicated region fallthrough
CT: control target
= control target key end

     0   :  { %s1293_s0 = inlined_call_operand.hbm [shape: f32[16,32], index: 0, kind: input, shape index: {}]   ;;  %s1294_s1 = inlined_call_operand.hbm [shape: bf16[32,128], index: 1, kind: input, shape index: {}]   ;;  %s1295_s2 = inlined_call_operand.vmem [shape: f32[1,128], index: 2, kind: input, shape index: {}]   ;;  %s1296_s3 = inlined_call_operand.hbm [shape: bf16[128,128], index: 3, kind: input, shape index: {}]   ;;  %s1297_s4 = inlined_call_operand.vmem [shape: f32[1,128], index: 4, kind: input, shape index: {}]   ;;  %s1298_s5 = inlined_call_operand.hbm [shape: bf16[128,128], index: 5, kind: input, shape index: {}]   ;;  %s1299_s6 = inlined_call_operand.vmem [shape: f32[1,128], index: 6, kind: input, shape index: {}]   ;;  %s1300_s7 = inlined_call_operand.hbm [shape: f32[16,128], index: 7, kind: output, shape index: {}]  }
   0x1   :  { %1301 = sst [smem:[#allocation15_spill]] %s1294_s1 }
   0x2   :  { %12 = vsyncpa [#allocation3], 0 }
   0x3   :  { %14 = vsyncpa [#allocation3 + $0x1], 0 }
   0x4   :  { %15 = vsyncpa [#allocation6], 0 }
   0x5   :  { %16 = vsyncpa [#allocation9], 0 }
   0x6   :  { %17 = vsyncpa [#allocation4], 0 }
   0x7   :  { %19 = vsyncpa [#allocation4 + $0x1], 0  ;;  %s1124_s24 = smov 0   ;;  %s1126_s25 = smov 0  }
   0x8   :  { %s1128_s26 = smov 0   ;;  %s1130_s27 = smov 0  }
   0x9 LB: > { %s1302_s1 = sld [smem:[#allocation15_spill]]  ;;  %s1148_s8 = sadd.s32 4294967295, %s1077_s27   ;;  %s1077_s27 = sphi %s1130_s27, %s1313_s27   ;;  %s1073_s26 = sphi %s1128_s26, %s1312_s26   ;;  %s1069_s25 = sphi %s1126_s25, %s1311_s25   ;;  %s1065_s24 = sphi %s1124_s24, %s1310_s24  }
   0xa   : > { %p688_p0 = scmp.ge.s32.totalorder %s1077_s27, 1  ;;  %p46_p1 = scmp.eq.s32.totalorder %s1148_s8, 0 }
   0xb   : > { %p208_p2 = scmp.lt.s32.totalorder %s1077_s27, 3  ;;  %s1079_s10 = smov [#allocation5]  }
   0xc   : > { %s221_s11 = sshll.u32 %s1079_s10, 4  ;;  %s236_s14 = sshll.u32 %s1296_s3, 4  ;;  %s222_s11 = int_to_ptr.vmem [resolvable:$true] %s221_s11  ;;  %s237_s14 = int_to_ptr.hbm [resolvable:$true] %s236_s14 }
   0xd   : > { %p1153_p3 = pnand %p688_p0, %p208_p2  ;;  %s253_s18 = sshll.u32 %s1298_s5, 4  ;;  %s254_s18 = int_to_ptr.hbm [resolvable:$true] %s253_s18 }
   0xe   : > { %s1080_s19 = smov [#allocation7]   ;;  %s1081_s21 = smov 64  }
   0xf   : > { %s219_s30 = sshll.u32 %s1302_s1, 4  ;;  %p813_p4 = pneg %p1153_p3  ;;  %s220_s30 = int_to_ptr.hbm [resolvable:$true] %s219_s30 }
  0x10   : > { %s238_s20 = sshll.u32 %s1080_s19, 4  ;;  %s1082_s22 = smov 4   ;;  %s239_s20 = int_to_ptr.vmem [resolvable:$true] %s238_s20 }
  0x11   : > { %p1165_p6 = pnand %p813_p4, %p46_p1  ;;  %s1083_s23 = smov [#allocation8]  }
  0x12   : > { %s255_s28 = sshll.u32 %s1083_s23, 4  ;;  %s687_s29 = sadd.s32 4294967294, %s1077_s27   ;;  %s256_s28 = int_to_ptr.vmem [resolvable:$true] %s255_s28 }
  0x13   : > { %816 = dma.hbm_to_vmem [thread:$0]  (!%p1165_p6), %s220_s30, 256, %s222_s11, [#allocation6], %s1081_s21, %s1081_s21, %s1082_s22  }
  0x14   : > { %819 = dma.hbm_to_vmem [thread:$0]  (!%p1165_p6), %s237_s14, 1024, %s239_s20, [#allocation6], %s1081_s21, %s1081_s21, %s1082_s22  }
  0x15   : > { %822 = dma.hbm_to_vmem [thread:$0]  (!%p1165_p6), %s254_s18, 1024, %s256_s28, [#allocation9], %s1081_s21, %s1081_s21, %s1082_s22  }
  0x16   : > { %s1180_s10 = sadd.s32 1, %s1077_s27   ;;  %s32_s12 = sadd.s32 1, %s1073_s26 }
  0x17   : > { %s29_s30 = ssub.s32 %s1077_s27, %s1180_s10  ;;  %p39_p7 = scmp.ne.s32.totalorder %s1073_s26, %s1069_s25 }
  0x18   : > { %p30_p8 = scmp.eq.s32.totalorder %s29_s30, 0  ;;  %p40_p9 = scmp.eq.s32.totalorder %s1077_s27, 0 }
  0x19   : > { %p45_p10 = scmp.ne.s32.totalorder %s1069_s25, %s1065_s24  ;;  %p195_p11 = scmp.eq.s32.totalorder %s1148_s8, 1 }
  0x1a   : > { %s1192_s11 = scalar_select %p30_p8, %s1073_s26, %s32_s12  }
  0x1b   : > { %p1196_p12 = por %p46_p1, %p45_p10  ;;  %p1200_p13 = por %p195_p11, %p39_p7 }
  0x1c   : > { %p201_p0 = scmp.eq.s32.totalorder %s687_s29, 1  ;;  %p41_p2 = por %p40_p9, %p39_p7 }
  0x1d   : > { %s272_s15 = sand.u32 1, %s1073_s26   ;;  %p834_p6 = scmp.lt.s32.totalorder %s1077_s27, 2 }
  0x1e   : > { %p1205_p4 = por %p201_p0, %p45_p10  ;;  %s693_s17 = sshll.u32 %s272_s15, 3 }
  0x1f   : > { %s694_s18 = sshll.u32 %s1077_s27, 3  ;;  %s276_s23 = scalar_lea.vmem [#allocation2], %s693_s17 }
  0x20   : > { %s280_s21 = scalar_lea.hbm %s1293_s0, %s694_s18  ;;  %s284_s28 = sshll.u32 %s276_s23, 4  ;;  %s285_s28 = int_to_ptr.vmem [resolvable:$true] %s284_s28 }
  0x21   : > { %s282_s22 = sshll.u32 %s280_s21, 4  ;;  %p1214_p8 = pnand %p834_p6, %p41_p2  ;;  %s283_s22 = int_to_ptr.hbm [resolvable:$true] %s282_s22 }
  0x22   : > { %s273_s12 = scalar_lea.sflag [#allocation3], %s272_s15  ;;  %s973_s30 = sshra.s32 %s283_s22, 4  ;;  %s974_s30 = int_to_ptr.hbm [resolvable:$true] %s973_s30 }
  0x23   : > { %s975_s1 = scalar_lea.hbm %s974_s30, 8  ;;  %p977_p9 = pneg %p1214_p8 }
  0x24   : > { %p976_p7 = scmp.ne.s32.totalorder %s974_s30, %s975_s1  ;;  %s980_s17 = scalar_lea.hbm %s1293_s0, 16 }
  0x25   : > { %p981_p0 = scmp.lt.s32.totalorder %s974_s30, %s1293_s0  ;;  %p982_p2 = scmp.lt.s32.totalorder %s980_s17, %s975_s1 }
  0x26   : > { %p978_p10 = pnand %p977_p9, %p976_p7 }
  0x27   : > { %p983_p6 = por %p982_p2, %p981_p0 }
  0x28   : > { %p979_p11 = pneg %p978_p10 }
  0x2a   : > { %p984_p5 = pnand %p983_p6, %p979_p11 }
  0x2c   : > { %987 = shalt.err (!%p984_p5)
}
  0x2d   : > { %826 = dma.hbm_to_vmem [thread:$0]  (!%p1214_p8), %s283_s22, 128, %s285_s28, %s273_s12  }
  0x2e   : > { %293 = sbr.rel (%p1153_p3) target bundleno = 493 (0x1ed), region = 48  ;;  %s1231_s15 = sand.u32 (!%p1153_p3), 1, %s1069_s25  }
  0x2f   : > { %s696_s23 = sshll.u32 (!%p1153_p3), %s1231_s15, 3  ;;  %s296_s18 = scalar_lea.sflag (!%p1153_p3), [#allocation3], %s1231_s15 }
  0x30   : > { %s299_s1 = scalar_lea.vmem (!%p1153_p3), [#allocation2], %s696_s23 }
  0x33   : > { %1048 = dma.done.wait (%p1196_p12), %s296_s18, 128  }
  0x34   : > { %1050 = vsyncadd (%p1196_p12), %s296_s18, 4294967168 }
  0x35   : > { %1052 = dma.done.wait (%p46_p1), [#allocation6], 1280  }
  0x36   : > { %1054 = vsyncadd (%p46_p1), [#allocation6], 4294966016 }
  0x37   : > { %1056 = dma.done.wait (%p46_p1), [#allocation9], 1024  }
  0x38   : > { %1058 = vsyncadd (%p46_p1), [#allocation9], 4294966272  ;;  %v780_v0 = vld [vmem:[#allocation5 + $0x8] sm:$0xff]  ;;  %v779_v2 = vld [vmem:[#allocation5] sm:$0xff]  ;;  %vm369_vm0 = vcmask 261120   ;;  %s776_s30 = sshll.u32 %s1148_s8, 3 }
  0x39   : > { %v788_v1 = vld [vmem:[#allocation7 + $0x38] sm:$0xff]  ;;  %379 = vmatpush.bf16.msra.mxu0 %v780_v0  ;;  %v347_v3 = vld [vmem:[%s299_s1] sm:$0xff]  ;;  %v787_v4 = vld [vmem:[#allocation7 + $0x30] sm:$0xff]  ;;  %s583_s20 = scalar_lea.hbm %s1300_s7, %s776_s30  ;;  %s345_s21 = scalar_lea.vmem [#allocation10], %s696_s23 }
  0x3a   : > { %456 = vmatpush.bf16.msra.mxu1 %v788_v1  ;;  %v353_v5 = vpack.c.bf16 %v347_v3, %v347_v3  ;;  %v786_v6 = vld [vmem:[#allocation7 + $0x28] sm:$0xff]  ;;  %v785_v7 = vld [vmem:[#allocation7 + $0x20] sm:$0xff]  ;;  %v784_v8 = vld [vmem:[#allocation7 + $0x18] sm:$0xff]  ;;  %s585_s18 = sshll.u32 %s345_s21, 4  ;;  %s587_s1 = sshll.u32 %s583_s20, 4  ;;  %s586_s18 = int_to_ptr.vmem [resolvable:$true] %s585_s18  ;;  %s588_s1 = int_to_ptr.hbm [resolvable:$true] %s587_s1 }
  0x3b   : > { %v783_v9 = vld [vmem:[#allocation7 + $0x10] sm:$0xff]  ;;  %v782_v10 = vld [vmem:[#allocation7 + $0x8] sm:$0xff]  ;;  %v781_v11 = vld [vmem:[#allocation7] sm:$0xff]  ;;  %s573_s8 = scalar_lea.sflag [#allocation4], %s1231_s15  ;;  %s1017_s9 = sshra.s32 %s588_s1, 4  ;;  %s1018_s9 = int_to_ptr.hbm [resolvable:$true] %s1017_s9 }
  0x3c   : > { %v796_v12 = vld [vmem:[#allocation8 + $0x38] sm:$0xff]  ;;  %v795_v13 = vld [vmem:[#allocation8 + $0x30] sm:$0xff]  ;;  %v794_v14 = vld [vmem:[#allocation8 + $0x28] sm:$0xff]  ;;  %s1019_s13 = scalar_lea.hbm %s1018_s9, 8  ;;  %s1023_s28 = scalar_lea.hbm %s1300_s7, 16 }
  0x3d   : > { %380 = vmatpush.bf16.msra.mxu0 %v779_v2  ;;  %539 = vmatpush.bf16.msra.mxu2 %v796_v12  ;;  %v793_v15 = vld [vmem:[#allocation8 + $0x20] sm:$0xff]  ;;  %v792_v16 = vld [vmem:[#allocation8 + $0x18] sm:$0xff]  ;;  %v791_v17 = vld [vmem:[#allocation8 + $0x10] sm:$0xff]  ;;  %p1020_p1 = scmp.ne.s32.totalorder %s1018_s9, %s1019_s13  ;;  %p1024_p12 = scmp.lt.s32.totalorder %s1018_s9, %s1300_s7 }
  0x3e   : > { %457 = vmatpush.bf16.msra.mxu1 %v787_v4  ;;  %v876_v18 = vld [vmem:[%s1295_s2] ss:$0 sm:$0xff]  ;;  %v790_v24 = vld [vmem:[#allocation8 + $0x8] sm:$0xff]  ;;  %p1025_p8 = scmp.lt.s32.totalorder %s1023_s28, %s1019_s13 }
  0x3f   : > { %v789_v25 = vld [vmem:[#allocation8] sm:$0xff]  ;;  %p1021_p3 = pnand %p1020_p1, %p1200_p13 }
  0x40   : > { %709 = vmatmul.msk.bf16.vlgmr.msra.gmra.mxu0 %vm369_vm0, %v353_v5  ;;  %v877_v26 = vld [vmem:[%s1297_s4] ss:$0 sm:$0xff]  ;;  %p1026_p7 = por %p1025_p8, %p1024_p12 }
  0x41   : > { %540 = vmatpush.bf16.msra.mxu2 %v795_v13  ;;  %v878_v32 = vld [vmem:[%s1299_s6] ss:$0 sm:$0xff]  ;;  %p1022_p5 = pneg %p1021_p3 }
  0x42   : > { %458 = vmatpush.bf16.msra.mxu1 %v786_v6 }
  0x43   : > { %p1027_p9 = pnand %p1026_p7, %p1022_p5 }
  0x45   : > { %541 = vmatpush.bf16.msra.mxu2 %v794_v14 }
  0x46   : > { %459 = vmatpush.bf16.msra.mxu1 %v785_v7 }
  0x49   : > { %542 = vmatpush.bf16.msra.mxu2 %v793_v15 }
  0x4a   : > { %460 = vmatpush.bf16.msra.mxu1 %v784_v8 }
  0x4d   : > { %543 = vmatpush.bf16.msra.mxu2 %v792_v16 }
  0x4e   : > { %461 = vmatpush.bf16.msra.mxu1 %v783_v9 }
  0x51   : > { %544 = vmatpush.bf16.msra.mxu2 %v791_v17 }
  0x52   : > { %462 = vmatpush.bf16.msra.mxu1 %v782_v10 }
  0x55   : > { %545 = vmatpush.bf16.msra.mxu2 %v790_v24 }
  0x56   : > { %463 = vmatpush.bf16.msra.mxu1 %v781_v11 }
  0x59   : > { %546 = vmatpush.bf16.msra.mxu2 %v789_v25 }
  0xbd   : > { %v382_v19 = vpop.f32.mrf.mxu0 }
  0xbe   : > { %v383_v20 = vadd.f32 %v876_v18, %v382_v19 }
  0xc0   : > { %v386_v21 = vmax.f32 %v383_v20, 0.0 }
  0xc2   : > { %v404_v22 = vpack.c.bf16 %v386_v21, %v386_v21 }
  0xc4   : > { %464 = vmatmul.bf16.vlgmr.msra.gmra.mxu1 %v404_v22 }
  0xc5   : > { %v384_v23 = vpop.f32.mrf.mxu0 }
 0x141   : > { %v465_v27 = vpop.f32.mrf.mxu1 }
 0x142   : > { %v466_v28 = vadd.f32 %v877_v26, %v465_v27 }
 0x144   : > { %v469_v29 = vmax.f32 %v466_v28, 0.0 }
 0x146   : > { %v487_v30 = vpack.c.bf16 %v469_v29, %v469_v29 }
 0x148   : > { %547 = vmatmul.bf16.vlgmr.msra.gmra.mxu2 %v487_v30 }
 0x149   : > { %v467_v31 = vpop.f32.mrf.mxu1 }
 0x1cb   : > { %v548_v33 = vpop.f32.mrf.mxu2 }
 0x1cc   : > { %v549_v34 = vadd.f32 %v878_v32, %v548_v33 }
 0x1ce   : > { %v774_v35 = vmul.f32 -1.442695, %v549_v34 }
 0x1d0   : > { %879 = vpow2.f32 %v774_v35 }
 0x1d3   : > { %v550_v36 = vpop.f32.mrf.mxu2 }
 0x1d6   : > { %v880_v37 = vpop.eup %879 }
 0x1d7   : > { %v555_v38 = vadd.f32 1.0, %v880_v37 }
 0x1d9   : > { %881 = vrcp.f32 %v555_v38  ;;  %v567_v42 = vand.u32 2147483648, %v555_v38  ;;  %v565_v44 = vand.u32 2147483647, %v555_v38  ;;  %vm561_vm2 = vweird.f32 %v555_v38 }
 0x1db   : > { %v568_v46 = vor.u32 1.1754944e-38, %v567_v42  ;;  %vm566_vm4 = vcmp.eq.f32.partialorder %v565_v44, 8.507059e+37 }
 0x1df   : > { %v882_v39 = vpop.eup %881 }
 0x1e0   : > { %v557_v40 = vmul.f32 %v882_v39, %v555_v38  ;;  %vm562_vm1 = vweird.f32 %v882_v39 }
 0x1e1   : > { %vm563_vm3 = vmor %vm561_vm2, %vm562_vm1 }
 0x1e2   : > { %v558_v41 = vsub.f32 1.0, %v557_v40 }
 0x1e4   : > { %v559_v43 = vmul.f32 %v882_v39, %v558_v41 }
 0x1e6   : > { %v560_v45 = vadd.f32 %v882_v39, %v559_v43 }
 0x1e8   : > { %v564_v47 = vsel %vm563_vm3, %v882_v39, %v560_v45 }
 0x1e9   : > { %v569_v48 = vsel %vm566_vm4, %v568_v46, %v564_v47 }
 0x1ea   : > { %571 = vst [vmem:[%s345_s21] sm:$0xff] %v569_v48 }
 0x1eb   : > { %1030 = shalt.err (!%p1027_p9)
}
 0x1ec   : > { %811 = dma.vmem_to_hbm [thread:$0]  (%p1200_p13), %s586_s18, 128, %s588_s1, %s573_s8  }
 0x1ed PF: > { %s599_s15 = sand.u32 1, %s1065_s24   ;;  %p1309_p10 = scmp.ge.s32.totalorder %s1077_s27, 2 }
 0x1ee   : > { %s600_s30 = scalar_lea.sflag [#allocation4], %s599_s15 }
 0x1ef   : > { %p828_p11 = pnand %p1309_p10, %p1205_p4 }
 0x1f1   : > { %p829_p0 = pneg %p828_p11 }
 0x1f3   : > { %1060 = dma.done.wait (%p829_p0), %s600_s30, 128  }
 0x1f4   : > { %1062 = vsyncadd (%p829_p0), %s600_s30, 4294967168  ;;  %p22_p2 = scmp.ge.s32.totalorder %s1180_s10, 4   ;;  %s1310_s24 = smov %s1069_s25 }
 0x1f5   : > { %s1311_s25 = smov %s1073_s26  ;;  %s1312_s26 = smov %s1192_s11 }
 0x1f6   : > { %s1313_s27 = smov %s1180_s10  ;;  %24 = sbr.rel (!%p22_p2) target bundleno = 9 (0x9), region = 105 }
 0x1fb   :  { %606 = vsyncpa [#allocation3], 1 }
 0x1fc   :  { %608 = vsyncpa [#allocation3 + $0x1], 1 }
 0x1fd   :  { %609 = vsyncpa [#allocation6], 1 }
 0x1fe   :  { %610 = vsyncpa [#allocation9], 1 }
 0x1ff   :  { %611 = vsyncpa [#allocation4], 1 }
 0x200   :  { %613 = vsyncpa [#allocation4 + $0x1], 1 }

</bundles_post_ra>
